<compile_context>
chip_gen: v5e
topology: v5e:2x2
jax: 0.10.0
libtpu: 0.0.40
codegen_flags: <defaults>
</compile_context>

<pallas_src>
from functools import partial

import numpy as np
import jax
import jax.numpy as jnp
from jax import lax
from jax.experimental import pallas as pl
from jax.experimental.pallas import tpu as pltpu

EPS = float(np.finfo(float).eps)      # matches np.finfo(float).eps in the torch code
PAIRWISE_WEIGHT = 0.5
NUM_ITERATIONS = 5
CLAMP_LO = 1e-5
CLAMP_HI = 1.0 - 1e-5

HALO = 8                               # >= NUM_ITERATIONS, kept a sublane multiple
LOG2E = 1.4426950408889634
W_LOG2E = PAIRWISE_WEIGHT * LOG2E      # exp(w*p) == exp2(p * W_LOG2E)

# Per-tile VMEM budget used to pick the strip height `tm`.  N_LIVE counts the
# double-buffered in/out blocks, the ~8 block-sized f32 temporaries of the
# unrolled loop *and* the two 2-D boundary masks (review: masks must be part of
# the estimate).
N_LIVE = 16
TILE_VMEM_TARGET = 12 << 20


def _round_up(x, m):
    return ((x + m - 1) // m) * m


def _cdiv(a, b):
    return -(-a // b)


def _vmem_cap_bytes():
    """Cap for a raised scoped-VMEM limit: ~3/4 of physical VMEM, i.e. ~48 MiB on
    v7x (64 MiB physical) and ~96 MiB on v5e/v6e (128 MiB physical)."""
    try:
        phys = int(pltpu.get_tpu_info().vmem_capacity_bytes)
    except Exception:                  # conservative fallback (assume v7x)
        phys = 64 << 20
    return max(32 << 20, (phys * 3) // 4)


def _pick_tile_rows(h, wp):
    """Rows per strip: as big as fits the per-tile VMEM budget, but split so that
    v7x's two TensorCores both get work on medium/large images."""
    rows_valid = _round_up(max(h, 1), 8)
    budget_rows = TILE_VMEM_TARGET // (4 * wp * N_LIVE) - 2 * HALO
    tm = max(HALO, (budget_rows // HALO) * HALO)
    tm = min(tm, rows_valid)
    if rows_valid >= 16 * HALO:        # worth splitting across 2 TCs (v7x)
        tm = min(tm, _round_up(_cdiv(rows_valid, 2), HALO))
    return tm


def _crf_tile_kernel(above_ref, main_ref, below_ref, o_ref, min_ref, max_ref,
                     *, h, w, tm):
    """One row strip: local rows = [8-row halo | tm interior rows | 8-row halo].

    Interior rows are exact: 5 iterations propagate influence <= 5 rows, the halo
    is 8, and the boundary masks use *global* row/col indices, so the interior
    computation is identical to a full-image computation.
    """
    i = pl.program_id(0)
    x = jnp.concatenate([above_ref[...], main_ref[...], below_ref[...]], axis=0)
    rows, cols = x.shape                               # (tm + 2*HALO, wp)

    # Global image coordinates of every element of the block.
    row_g = lax.broadcasted_iota(jnp.int32, (rows, cols), 0) + (i * tm - HALO)
    col = lax.broadcasted_iota(jnp.int32, (rows, cols), 1)
    # Masks for the *forward* (down / right) neighbour diffs.  They also kill the
    # top/bottom padding, the right padding and the roll wrap-around, so padded
    # values can never leak into valid pixels.
    has_down = (row_g >= 0) & (row_g <= h - 2)
    has_right = col <= w - 2

    refined = x
    for _ in range(NUM_ITERATIONS):                    # small -> fully unrolled
        # Forward neighbour values via single static rotations (XLU slot).
        down = pltpu.roll(refined, shift=rows - 1, axis=0)    # refined[r+1, c]
        right = pltpu.roll(refined, shift=cols - 1, axis=1)   # refined[r, c+1]
        dv = jnp.where(has_down, jnp.abs(refined - down), 0.0)
        dh = jnp.where(has_right, jnp.abs(refined - right), 0.0)
        # Up/left contributions are the same masked diffs shifted down/right by 1.
        pairwise = (dv + pltpu.roll(dv, shift=1, axis=0)) + \
                   (dh + pltpu.roll(dh, shift=1, axis=1))
        # sigmoid(log(r) - w*p) == r / (r + exp(w*p)); `+ EPS` dropped (f32 no-op
        # for values clamped >= 1e-5) and log2(e) folded into the weight.
        den = refined + jnp.exp2(pairwise * W_LOG2E)
        inv = pl.reciprocal(den, approx=True)          # EUP slot
        inv = inv * (2.0 - den * inv)                  # one Newton step -> ~f32 accuracy
        refined = jnp.clip(refined * inv, CLAMP_LO, CLAMP_HI)

    interior = refined[HALO:HALO + tm, :]
    o_ref[...] = interior

    # Per-tile min/max over the valid pixels only (fill values can never win
    # against values clamped to [1e-5, 1 - 1e-5]).
    gi = lax.broadcasted_iota(jnp.int32, (tm, cols), 0) + i * tm
    ci = lax.broadcasted_iota(jnp.int32, (tm, cols), 1)
    valid = (gi < h) & (ci < w)
    r_min = jnp.min(jnp.where(valid, interior, 2.0))
    r_max = jnp.max(jnp.where(valid, interior, -1.0))
    min_ref[...] = jnp.full((8, 128), r_min, dtype=jnp.float32)
    max_ref[...] = jnp.full((8, 128), r_max, dtype=jnp.float32)


def crf_refine(unary_probs):
    """unary_probs: jnp.ndarray [1, 1, H, W] float32, values in (0, 1)."""
    assert unary_probs.ndim == 4 and unary_probs.shape[:2] == (1, 1)
    H, W = int(unary_probs.shape[2]), int(unary_probs.shape[3])
    x2d = unary_probs.reshape(H, W).astype(jnp.float32)

    # Lane-dense layout: the larger spatial dim goes on the 128-lane (last) axis.
    transposed = H > W
    if transposed:
        x2d = x2d.T
    h, w = x2d.shape

    wp = _round_up(w, 128)
    tm = _pick_tile_rows(h, wp)
    n_tiles = _cdiv(h, tm)
    block_rows = tm + 2 * HALO

    # Padded row layout: [tm rows pad | image rows | pad], total
    # (n_tiles + 1) * tm + HALO rows.  The tm-row top pad makes every halo/main
    # block index non-negative and keeps plain *blocked* BlockSpecs for the
    # overlapping halo windows.
    total_rows = (n_tiles + 1) * tm + HALO
    x_pad = jnp.pad(x2d, ((tm, total_rows - tm - h), (0, wp - w)),
                    constant_values=0.5)
    out_rows = n_tiles * tm

    # Raise the scoped-VMEM limit only if a single tile would not fit the default
    # budget (pathologically wide images); cap per chip generation.
    est = 4 * block_rows * wp * N_LIVE
    vmem_limit = min(est + (2 << 20), _vmem_cap_bytes()) if est > (12 << 20) else None
    # TODO(synk): column tiling (with 5-col halos) for extremely wide images where
    #             even an 8-row strip exceeds the per-tile VMEM budget.

    elems = n_tiles * block_rows * wp
    cost = pl.CostEstimate(
        flops=22 * NUM_ITERATIONS * elems,
        transcendentals=2 * NUM_ITERATIONS * elems,
        bytes_accessed=4 * (elems + out_rows * wp + 2 * n_tiles * 8 * 128),
    )

    tiles8 = tm // HALO
    out, mins, maxs = pl.pallas_call(
        partial(_crf_tile_kernel, h=h, w=w, tm=tm),
        grid=(n_tiles,),
        out_shape=(
            jax.ShapeDtypeStruct((out_rows, wp), jnp.float32),
            jax.ShapeDtypeStruct((n_tiles * 8, 128), jnp.float32),
            jax.ShapeDtypeStruct((n_tiles * 8, 128), jnp.float32),
        ),
        in_specs=[
            # 8-row halo above, the tm-row strip, 8-row halo below — three blocked
            # views of the same padded array (overlap without pl.Element/manual DMA).
            pl.BlockSpec((HALO, wp), lambda i: ((i + 1) * tiles8 - 1, 0)),
            pl.BlockSpec((tm, wp), lambda i: (i + 1, 0)),
            pl.BlockSpec((HALO, wp), lambda i: ((i + 2) * tiles8, 0)),
        ],
        out_specs=(
            pl.BlockSpec((tm, wp), lambda i: (i, 0)),
            pl.BlockSpec((8, 128), lambda i: (i, 0)),
            pl.BlockSpec((8, 128), lambda i: (i, 0)),
        ),
        compiler_params=pltpu.CompilerParams(
            dimension_semantics=("parallel",),   # row strips are independent
            vmem_limit_bytes=vmem_limit,
        ),
        cost_estimate=cost,
    )(x_pad, x_pad, x_pad)

    # Global min/max + normalization: tiny jnp second stage over the per-tile
    # partials, matching the reference's (x - min) / (max_shifted + EPS).
    gmin = jnp.min(mins)
    gmax = jnp.max(maxs)
    refined = (out[:h, :w] - gmin) / ((gmax - gmin) + EPS)
    if transposed:
        refined = refined.T
    return refined.reshape(1, 1, H, W)


def _crf_refine_ref(unary_probs):
    """Pure-JAX reference mirroring the torch forward, for correctness checking."""
    refined = unary_probs.astype(jnp.float32)
    for _ in range(NUM_ITERATIONS):
        unary_energy = -jnp.log(refined + EPS)
        pairwise = jnp.zeros_like(refined)
        dv = jnp.abs(refined[:, :, :-1, :] - refined[:, :, 1:, :])
        dh = jnp.abs(refined[:, :, :, :-1] - refined[:, :, :, 1:])
        pairwise = pairwise.at[:, :, :-1, :].add(dv)
        pairwise = pairwise.at[:, :, 1:, :].add(dv)
        pairwise = pairwise.at[:, :, :, :-1].add(dh)
        pairwise = pairwise.at[:, :, :, 1:].add(dh)
        total = unary_energy + PAIRWISE_WEIGHT * pairwise
        refined = jax.nn.sigmoid(-total)
        refined = jnp.clip(refined, CLAMP_LO, CLAMP_HI)
    refined = refined - jnp.min(refined)
    refined = refined / (jnp.max(refined) + EPS)
    return refined


if __name__ == "__main__":
    key = jax.random.PRNGKey(0)
    crf = jax.jit(crf_refine)

    # Small single-tile case (primary example).
    x1 = jax.random.uniform(key, (1, 1, 16, 16), jnp.float32,
                            minval=0.01, maxval=0.99)
    out1 = jax.block_until_ready(crf(x1))
    ref1 = jax.block_until_ready(_crf_refine_ref(x1))

    # Multi-tile case: exercises the row-strip grid, halos, the H>W transpose
    # and right-column padding paths.
    key2 = jax.random.split(key, 2)[1]
    x2 = jax.random.uniform(key2, (1, 1, 200, 160), jnp.float32,
                            minval=0.01, maxval=0.99)
    out2 = jax.block_until_ready(crf(x2))
    ref2 = jax.block_until_ready(_crf_refine_ref(x2))

    # Kernel and reference are algebraically identical but reorder f32 rounding
    # (fused sigmoid form, exp2 constant folding, approx-recip + Newton step);
    # the final 1/(max-min) normalization amplifies those ulp-level differences
    # by the inverse dynamic range, hence the slightly relaxed tolerance.
    np.testing.assert_allclose(np.asarray(out1), np.asarray(ref1),
                               rtol=2e-4, atol=2e-4)
    np.testing.assert_allclose(np.asarray(out2), np.asarray(ref2),
                               rtol=2e-4, atol=2e-4)

    print("KERNEL_OK")
</pallas_src>

<mosaic_0001>
module attributes {stable_mosaic.version = 11 : i64} {
  func.func @_crf_tile_kernel(%arg0: i32, %arg1: memref<8x128xf32, #tpu.memory_space<vmem>>, %arg2: memref<16x128xf32, #tpu.memory_space<vmem>>, %arg3: memref<8x128xf32, #tpu.memory_space<vmem>>, %arg4: memref<16x128xf32, #tpu.memory_space<vmem>>, %arg5: memref<8x128xf32, #tpu.memory_space<vmem>>, %arg6: memref<8x128xf32, #tpu.memory_space<vmem>>) attributes {dimension_semantics = [#tpu.dimension_semantics<parallel>], iteration_bounds = array<i64: 1>, scalar_prefetch = 0 : i64, scratch_operands = 0 : i64, tpu.core_type = #tpu.core_type<tc>, window_params = [{transform_indices = @transform_0, window_bounds = array<i64: 8, 128>}, {transform_indices = @transform_1, window_bounds = array<i64: 16, 128>}, {transform_indices = @transform_2, window_bounds = array<i64: 8, 128>}, {transform_indices = @transform_3, window_bounds = array<i64: 16, 128>}, {transform_indices = @transform_4, window_bounds = array<i64: 8, 128>}, {transform_indices = @transform_5, window_bounds = array<i64: 8, 128>}]} {
    %c0 = arith.constant 0 : index
    %c0_0 = arith.constant 0 : index
    %0 = vector.load %arg1[%c0, %c0_0] : memref<8x128xf32, #tpu.memory_space<vmem>>, vector<8x128xf32>
    %c0_1 = arith.constant 0 : index
    %c0_2 = arith.constant 0 : index
    %1 = vector.load %arg2[%c0_1, %c0_2] : memref<16x128xf32, #tpu.memory_space<vmem>>, vector<16x128xf32>
    %c0_3 = arith.constant 0 : index
    %c0_4 = arith.constant 0 : index
    %2 = vector.load %arg3[%c0_3, %c0_4] : memref<8x128xf32, #tpu.memory_space<vmem>>, vector<8x128xf32>
    %3 = tpu.concatenate %0, %1, %2 in 0 : vector<8x128xf32>, vector<16x128xf32>, vector<8x128xf32> -> vector<32x128xf32>
    %4 = tpu.iota {dimensions = array<i32: 0>} : vector<32x128xi32>
    %c16_i32 = arith.constant 16 : i32
    %5 = arith.muli %arg0, %c16_i32 : i32
    %c8_i32 = arith.constant 8 : i32
    %6 = arith.subi %5, %c8_i32 : i32
    %7 = vector.broadcast %6 : i32 to vector<32x128xi32>
    %8 = arith.addi %4, %7 : vector<32x128xi32>
    %9 = tpu.iota {dimensions = array<i32: 1>} : vector<32x128xi32>
    %c0_i32 = arith.constant 0 : i32
    %10 = vector.broadcast %c0_i32 : i32 to vector<32x128xi32>
    %11 = arith.cmpi sge, %8, %10 : vector<32x128xi32>
    %c14_i32 = arith.constant 14 : i32
    %12 = vector.broadcast %c14_i32 : i32 to vector<32x128xi32>
    %13 = arith.cmpi sle, %8, %12 : vector<32x128xi32>
    %14 = arith.andi %11, %13 : vector<32x128xi1>
    %c14_i32_5 = arith.constant 14 : i32
    %15 = vector.broadcast %c14_i32_5 : i32 to vector<32x128xi32>
    %16 = arith.cmpi sle, %9, %15 : vector<32x128xi32>
    %c31_i32 = arith.constant 31 : i32
    %17 = tpu.dynamic_rotate %3 by %c31_i32 dim 0 : vector<32x128xf32>, i32 -> vector<32x128xf32>
    %c127_i32 = arith.constant 127 : i32
    %18 = tpu.dynamic_rotate %3 by %c127_i32 dim 1 : vector<32x128xf32>, i32 -> vector<32x128xf32>
    %19 = arith.subf %3, %17 : vector<32x128xf32>
    %20 = math.absf %19 : vector<32x128xf32>
    %cst = arith.constant 0.000000e+00 : f32
    %21 = vector.broadcast %cst : f32 to vector<32x128xf32>
    %22 = arith.select %14, %20, %21 : vector<32x128xi1>, vector<32x128xf32>
    %23 = arith.subf %3, %18 : vector<32x128xf32>
    %24 = math.absf %23 : vector<32x128xf32>
    %cst_6 = arith.constant 0.000000e+00 : f32
    %25 = vector.broadcast %cst_6 : f32 to vector<32x128xf32>
    %26 = arith.select %16, %24, %25 : vector<32x128xi1>, vector<32x128xf32>
    %c1_i32 = arith.constant 1 : i32
    %27 = tpu.dynamic_rotate %22 by %c1_i32 dim 0 : vector<32x128xf32>, i32 -> vector<32x128xf32>
    %28 = arith.addf %22, %27 : vector<32x128xf32>
    %c1_i32_7 = arith.constant 1 : i32
    %29 = tpu.dynamic_rotate %26 by %c1_i32_7 dim 1 : vector<32x128xf32>, i32 -> vector<32x128xf32>
    %30 = arith.addf %26, %29 : vector<32x128xf32>
    %31 = arith.addf %28, %30 : vector<32x128xf32>
    %cst_8 = arith.constant 0.72134751 : f32
    %32 = vector.broadcast %cst_8 : f32 to vector<32x128xf32>
    %33 = arith.mulf %31, %32 : vector<32x128xf32>
    %34 = math.exp2 %33 : vector<32x128xf32>
    %35 = arith.addf %3, %34 : vector<32x128xf32>
    %36 = tpu.reciprocal %35 {approx = true} : vector<32x128xf32> -> vector<32x128xf32>
    %37 = arith.mulf %35, %36 : vector<32x128xf32>
    %cst_9 = arith.constant 2.000000e+00 : f32
    %38 = vector.broadcast %cst_9 : f32 to vector<32x128xf32>
    %39 = arith.subf %38, %37 : vector<32x128xf32>
    %40 = arith.mulf %36, %39 : vector<32x128xf32>
    %41 = arith.mulf %3, %40 : vector<32x128xf32>
    %cst_10 = arith.constant 9.99999974E-6 : f32
    %cst_11 = arith.constant 0.999989986 : f32
    %42 = vector.broadcast %cst_10 : f32 to vector<32x128xf32>
    %43 = arith.maximumf %42, %41 : vector<32x128xf32>
    %44 = vector.broadcast %cst_11 : f32 to vector<32x128xf32>
    %45 = arith.minimumf %44, %43 : vector<32x128xf32>
    %c31_i32_12 = arith.constant 31 : i32
    %46 = tpu.dynamic_rotate %45 by %c31_i32_12 dim 0 : vector<32x128xf32>, i32 -> vector<32x128xf32>
    %c127_i32_13 = arith.constant 127 : i32
    %47 = tpu.dynamic_rotate %45 by %c127_i32_13 dim 1 : vector<32x128xf32>, i32 -> vector<32x128xf32>
    %48 = arith.subf %45, %46 : vector<32x128xf32>
    %49 = math.absf %48 : vector<32x128xf32>
    %cst_14 = arith.constant 0.000000e+00 : f32
    %50 = vector.broadcast %cst_14 : f32 to vector<32x128xf32>
    %51 = arith.select %14, %49, %50 : vector<32x128xi1>, vector<32x128xf32>
    %52 = arith.subf %45, %47 : vector<32x128xf32>
    %53 = math.absf %52 : vector<32x128xf32>
    %cst_15 = arith.constant 0.000000e+00 : f32
    %54 = vector.broadcast %cst_15 : f32 to vector<32x128xf32>
    %55 = arith.select %16, %53, %54 : vector<32x128xi1>, vector<32x128xf32>
    %c1_i32_16 = arith.constant 1 : i32
    %56 = tpu.dynamic_rotate %51 by %c1_i32_16 dim 0 : vector<32x128xf32>, i32 -> vector<32x128xf32>
    %57 = arith.addf %51, %56 : vector<32x128xf32>
    %c1_i32_17 = arith.constant 1 : i32
    %58 = tpu.dynamic_rotate %55 by %c1_i32_17 dim 1 : vector<32x128xf32>, i32 -> vector<32x128xf32>
    %59 = arith.addf %55, %58 : vector<32x128xf32>
    %60 = arith.addf %57, %59 : vector<32x128xf32>
    %cst_18 = arith.constant 0.72134751 : f32
    %61 = vector.broadcast %cst_18 : f32 to vector<32x128xf32>
    %62 = arith.mulf %60, %61 : vector<32x128xf32>
    %63 = math.exp2 %62 : vector<32x128xf32>
    %64 = arith.addf %45, %63 : vector<32x128xf32>
    %65 = tpu.reciprocal %64 {approx = true} : vector<32x128xf32> -> vector<32x128xf32>
    %66 = arith.mulf %64, %65 : vector<32x128xf32>
    %cst_19 = arith.constant 2.000000e+00 : f32
    %67 = vector.broadcast %cst_19 : f32 to vector<32x128xf32>
    %68 = arith.subf %67, %66 : vector<32x128xf32>
    %69 = arith.mulf %65, %68 : vector<32x128xf32>
    %70 = arith.mulf %45, %69 : vector<32x128xf32>
    %cst_20 = arith.constant 9.99999974E-6 : f32
    %cst_21 = arith.constant 0.999989986 : f32
    %71 = vector.broadcast %cst_20 : f32 to vector<32x128xf32>
    %72 = arith.maximumf %71, %70 : vector<32x128xf32>
    %73 = vector.broadcast %cst_21 : f32 to vector<32x128xf32>
    %74 = arith.minimumf %73, %72 : vector<32x128xf32>
    %c31_i32_22 = arith.constant 31 : i32
    %75 = tpu.dynamic_rotate %74 by %c31_i32_22 dim 0 : vector<32x128xf32>, i32 -> vector<32x128xf32>
    %c127_i32_23 = arith.constant 127 : i32
    %76 = tpu.dynamic_rotate %74 by %c127_i32_23 dim 1 : vector<32x128xf32>, i32 -> vector<32x128xf32>
    %77 = arith.subf %74, %75 : vector<32x128xf32>
    %78 = math.absf %77 : vector<32x128xf32>
    %cst_24 = arith.constant 0.000000e+00 : f32
    %79 = vector.broadcast %cst_24 : f32 to vector<32x128xf32>
    %80 = arith.select %14, %78, %79 : vector<32x128xi1>, vector<32x128xf32>
    %81 = arith.subf %74, %76 : vector<32x128xf32>
    %82 = math.absf %81 : vector<32x128xf32>
    %cst_25 = arith.constant 0.000000e+00 : f32
    %83 = vector.broadcast %cst_25 : f32 to vector<32x128xf32>
    %84 = arith.select %16, %82, %83 : vector<32x128xi1>, vector<32x128xf32>
    %c1_i32_26 = arith.constant 1 : i32
    %85 = tpu.dynamic_rotate %80 by %c1_i32_26 dim 0 : vector<32x128xf32>, i32 -> vector<32x128xf32>
    %86 = arith.addf %80, %85 : vector<32x128xf32>
    %c1_i32_27 = arith.constant 1 : i32
    %87 = tpu.dynamic_rotate %84 by %c1_i32_27 dim 1 : vector<32x128xf32>, i32 -> vector<32x128xf32>
    %88 = arith.addf %84, %87 : vector<32x128xf32>
    %89 = arith.addf %86, %88 : vector<32x128xf32>
    %cst_28 = arith.constant 0.72134751 : f32
    %90 = vector.broadcast %cst_28 : f32 to vector<32x128xf32>
    %91 = arith.mulf %89, %90 : vector<32x128xf32>
    %92 = math.exp2 %91 : vector<32x128xf32>
    %93 = arith.addf %74, %92 : vector<32x128xf32>
    %94 = tpu.reciprocal %93 {approx = true} : vector<32x128xf32> -> vector<32x128xf32>
    %95 = arith.mulf %93, %94 : vector<32x128xf32>
    %cst_29 = arith.constant 2.000000e+00 : f32
    %96 = vector.broadcast %cst_29 : f32 to vector<32x128xf32>
    %97 = arith.subf %96, %95 : vector<32x128xf32>
    %98 = arith.mulf %94, %97 : vector<32x128xf32>
    %99 = arith.mulf %74, %98 : vector<32x128xf32>
    %cst_30 = arith.constant 9.99999974E-6 : f32
    %cst_31 = arith.constant 0.999989986 : f32
    %100 = vector.broadcast %cst_30 : f32 to vector<32x128xf32>
    %101 = arith.maximumf %100, %99 : vector<32x128xf32>
    %102 = vector.broadcast %cst_31 : f32 to vector<32x128xf32>
    %103 = arith.minimumf %102, %101 : vector<32x128xf32>
    %c31_i32_32 = arith.constant 31 : i32
    %104 = tpu.dynamic_rotate %103 by %c31_i32_32 dim 0 : vector<32x128xf32>, i32 -> vector<32x128xf32>
    %c127_i32_33 = arith.constant 127 : i32
    %105 = tpu.dynamic_rotate %103 by %c127_i32_33 dim 1 : vector<32x128xf32>, i32 -> vector<32x128xf32>
    %106 = arith.subf %103, %104 : vector<32x128xf32>
    %107 = math.absf %106 : vector<32x128xf32>
    %cst_34 = arith.constant 0.000000e+00 : f32
    %108 = vector.broadcast %cst_34 : f32 to vector<32x128xf32>
    %109 = arith.select %14, %107, %108 : vector<32x128xi1>, vector<32x128xf32>
    %110 = arith.subf %103, %105 : vector<32x128xf32>
    %111 = math.absf %110 : vector<32x128xf32>
    %cst_35 = arith.constant 0.000000e+00 : f32
    %112 = vector.broadcast %cst_35 : f32 to vector<32x128xf32>
    %113 = arith.select %16, %111, %112 : vector<32x128xi1>, vector<32x128xf32>
    %c1_i32_36 = arith.constant 1 : i32
    %114 = tpu.dynamic_rotate %109 by %c1_i32_36 dim 0 : vector<32x128xf32>, i32 -> vector<32x128xf32>
    %115 = arith.addf %109, %114 : vector<32x128xf32>
    %c1_i32_37 = arith.constant 1 : i32
    %116 = tpu.dynamic_rotate %113 by %c1_i32_37 dim 1 : vector<32x128xf32>, i32 -> vector<32x128xf32>
    %117 = arith.addf %113, %116 : vector<32x128xf32>
    %118 = arith.addf %115, %117 : vector<32x128xf32>
    %cst_38 = arith.constant 0.72134751 : f32
    %119 = vector.broadcast %cst_38 : f32 to vector<32x128xf32>
    %120 = arith.mulf %118, %119 : vector<32x128xf32>
    %121 = math.exp2 %120 : vector<32x128xf32>
    %122 = arith.addf %103, %121 : vector<32x128xf32>
    %123 = tpu.reciprocal %122 {approx = true} : vector<32x128xf32> -> vector<32x128xf32>
    %124 = arith.mulf %122, %123 : vector<32x128xf32>
    %cst_39 = arith.constant 2.000000e+00 : f32
    %125 = vector.broadcast %cst_39 : f32 to vector<32x128xf32>
    %126 = arith.subf %125, %124 : vector<32x128xf32>
    %127 = arith.mulf %123, %126 : vector<32x128xf32>
    %128 = arith.mulf %103, %127 : vector<32x128xf32>
    %cst_40 = arith.constant 9.99999974E-6 : f32
    %cst_41 = arith.constant 0.999989986 : f32
    %129 = vector.broadcast %cst_40 : f32 to vector<32x128xf32>
    %130 = arith.maximumf %129, %128 : vector<32x128xf32>
    %131 = vector.broadcast %cst_41 : f32 to vector<32x128xf32>
    %132 = arith.minimumf %131, %130 : vector<32x128xf32>
    %c31_i32_42 = arith.constant 31 : i32
    %133 = tpu.dynamic_rotate %132 by %c31_i32_42 dim 0 : vector<32x128xf32>, i32 -> vector<32x128xf32>
    %c127_i32_43 = arith.constant 127 : i32
    %134 = tpu.dynamic_rotate %132 by %c127_i32_43 dim 1 : vector<32x128xf32>, i32 -> vector<32x128xf32>
    %135 = arith.subf %132, %133 : vector<32x128xf32>
    %136 = math.absf %135 : vector<32x128xf32>
    %cst_44 = arith.constant 0.000000e+00 : f32
    %137 = vector.broadcast %cst_44 : f32 to vector<32x128xf32>
    %138 = arith.select %14, %136, %137 : vector<32x128xi1>, vector<32x128xf32>
    %139 = arith.subf %132, %134 : vector<32x128xf32>
    %140 = math.absf %139 : vector<32x128xf32>
    %cst_45 = arith.constant 0.000000e+00 : f32
    %141 = vector.broadcast %cst_45 : f32 to vector<32x128xf32>
    %142 = arith.select %16, %140, %141 : vector<32x128xi1>, vector<32x128xf32>
    %c1_i32_46 = arith.constant 1 : i32
    %143 = tpu.dynamic_rotate %138 by %c1_i32_46 dim 0 : vector<32x128xf32>, i32 -> vector<32x128xf32>
    %144 = arith.addf %138, %143 : vector<32x128xf32>
    %c1_i32_47 = arith.constant 1 : i32
    %145 = tpu.dynamic_rotate %142 by %c1_i32_47 dim 1 : vector<32x128xf32>, i32 -> vector<32x128xf32>
    %146 = arith.addf %142, %145 : vector<32x128xf32>
    %147 = arith.addf %144, %146 : vector<32x128xf32>
    %cst_48 = arith.constant 0.72134751 : f32
    %148 = vector.broadcast %cst_48 : f32 to vector<32x128xf32>
    %149 = arith.mulf %147, %148 : vector<32x128xf32>
    %150 = math.exp2 %149 : vector<32x128xf32>
    %151 = arith.addf %132, %150 : vector<32x128xf32>
    %152 = tpu.reciprocal %151 {approx = true} : vector<32x128xf32> -> vector<32x128xf32>
    %153 = arith.mulf %151, %152 : vector<32x128xf32>
    %cst_49 = arith.constant 2.000000e+00 : f32
    %154 = vector.broadcast %cst_49 : f32 to vector<32x128xf32>
    %155 = arith.subf %154, %153 : vector<32x128xf32>
    %156 = arith.mulf %152, %155 : vector<32x128xf32>
    %157 = arith.mulf %132, %156 : vector<32x128xf32>
    %cst_50 = arith.constant 9.99999974E-6 : f32
    %cst_51 = arith.constant 0.999989986 : f32
    %158 = vector.broadcast %cst_50 : f32 to vector<32x128xf32>
    %159 = arith.maximumf %158, %157 : vector<32x128xf32>
    %160 = vector.broadcast %cst_51 : f32 to vector<32x128xf32>
    %161 = arith.minimumf %160, %159 : vector<32x128xf32>
    %162 = vector.extract_strided_slice %161 {offsets = [8, 0], sizes = [16, 128], strides = [1, 1]} : vector<32x128xf32> to vector<16x128xf32>
    %c0_52 = arith.constant 0 : index
    %c0_53 = arith.constant 0 : index
    %163 = vector.load %arg4[%c0_52, %c0_53] : memref<16x128xf32, #tpu.memory_space<vmem>>, vector<16x128xf32>
    tpu.vector_store %arg4[%c0_52, %c0_53], %162 {strides = array<i32>} : memref<16x128xf32, #tpu.memory_space<vmem>>, vector<16x128xf32>,
    %164 = tpu.iota {dimensions = array<i32: 0>} : vector<16x128xi32>
    %c16_i32_54 = arith.constant 16 : i32
    %165 = arith.muli %arg0, %c16_i32_54 : i32
    %166 = vector.broadcast %165 : i32 to vector<16x128xi32>
    %167 = arith.addi %164, %166 : vector<16x128xi32>
    %168 = tpu.iota {dimensions = array<i32: 1>} : vector<16x128xi32>
    %c16_i32_55 = arith.constant 16 : i32
    %169 = vector.broadcast %c16_i32_55 : i32 to vector<16x128xi32>
    %170 = arith.cmpi slt, %167, %169 : vector<16x128xi32>
    %c16_i32_56 = arith.constant 16 : i32
    %171 = vector.broadcast %c16_i32_56 : i32 to vector<16x128xi32>
    %172 = arith.cmpi slt, %168, %171 : vector<16x128xi32>
    %173 = arith.andi %170, %172 : vector<16x128xi1>
    %cst_57 = arith.constant 2.000000e+00 : f32
    %174 = vector.broadcast %cst_57 : f32 to vector<16x128xf32>
    %175 = arith.select %173, %162, %174 : vector<16x128xi1>, vector<16x128xf32>
    %176 = vector.shape_cast %175 : vector<16x128xf32> to vector<1x16x128xf32>
    %cst_58 = arith.constant dense<0x7F800000> : vector<1xf32>
    %177 = vector.multi_reduction <minimumf>, %176, %cst_58 [1, 2] : vector<1x16x128xf32> to vector<1xf32>
    %178 = vector.shape_cast %177 : vector<1xf32> to vector<1x1x1xf32>
    %179 = vector.extract %178[0, 0, 0] : f32 from vector<1x1x1xf32>
    %cst_59 = arith.constant -1.000000e+00 : f32
    %180 = vector.broadcast %cst_59 : f32 to vector<16x128xf32>
    %181 = arith.select %173, %162, %180 : vector<16x128xi1>, vector<16x128xf32>
    %182 = vector.shape_cast %181 : vector<16x128xf32> to vector<1x16x128xf32>
    %cst_60 = arith.constant dense<0xFF800000> : vector<1xf32>
    %183 = vector.multi_reduction <maximumf>, %182, %cst_60 [1, 2] : vector<1x16x128xf32> to vector<1xf32>
    %184 = vector.shape_cast %183 : vector<1xf32> to vector<1x1x1xf32>
    %185 = vector.extract %184[0, 0, 0] : f32 from vector<1x1x1xf32>
    %186 = vector.broadcast %179 : f32 to vector<8x128xf32>
    %c0_61 = arith.constant 0 : index
    %c0_62 = arith.constant 0 : index
    %187 = vector.load %arg5[%c0_61, %c0_62] : memref<8x128xf32, #tpu.memory_space<vmem>>, vector<8x128xf32>
    tpu.vector_store %arg5[%c0_61, %c0_62], %186 {strides = array<i32>} : memref<8x128xf32, #tpu.memory_space<vmem>>, vector<8x128xf32>,
    %188 = vector.broadcast %185 : f32 to vector<8x128xf32>
    %c0_63 = arith.constant 0 : index
    %c0_64 = arith.constant 0 : index
    %189 = vector.load %arg6[%c0_63, %c0_64] : memref<8x128xf32, #tpu.memory_space<vmem>>, vector<8x128xf32>
    tpu.vector_store %arg6[%c0_63, %c0_64], %188 {strides = array<i32>} : memref<8x128xf32, #tpu.memory_space<vmem>>, vector<8x128xf32>,
    return
  }
  func.func @transform_0(%arg0: i32) -> (i32, i32) {
    %c1_i32 = arith.constant 1 : i32
    %0 = arith.addi %arg0, %c1_i32 : i32
    %c2_i32 = arith.constant 2 : i32
    %1 = arith.muli %0, %c2_i32 : i32
    %c1_i32_0 = arith.constant 1 : i32
    %2 = arith.subi %1, %c1_i32_0 : i32
    %c0_i32 = arith.constant 0 : i32
    %c0_i32_1 = arith.constant 0 : i32
    return %2, %c0_i32 : i32, i32
  }
  func.func @transform_1(%arg0: i32) -> (i32, i32) {
    %c1_i32 = arith.constant 1 : i32
    %0 = arith.addi %arg0, %c1_i32 : i32
    %c0_i32 = arith.constant 0 : i32
    %c0_i32_0 = arith.constant 0 : i32
    return %0, %c0_i32 : i32, i32
  }
  func.func @transform_2(%arg0: i32) -> (i32, i32) {
    %c2_i32 = arith.constant 2 : i32
    %0 = arith.addi %arg0, %c2_i32 : i32
    %c2_i32_0 = arith.constant 2 : i32
    %1 = arith.muli %0, %c2_i32_0 : i32
    %c0_i32 = arith.constant 0 : i32
    %c0_i32_1 = arith.constant 0 : i32
    return %1, %c0_i32 : i32, i32
  }
  func.func @transform_3(%arg0: i32) -> (i32, i32) {
    %c0_i32 = arith.constant 0 : i32
    %c0_i32_0 = arith.constant 0 : i32
    return %arg0, %c0_i32 : i32, i32
  }
  func.func @transform_4(%arg0: i32) -> (i32, i32) {
    %c0_i32 = arith.constant 0 : i32
    %c0_i32_0 = arith.constant 0 : i32
    return %arg0, %c0_i32 : i32, i32
  }
  func.func @transform_5(%arg0: i32) -> (i32, i32) {
    %c0_i32 = arith.constant 0 : i32
    %c0_i32_0 = arith.constant 0 : i32
    return %arg0, %c0_i32 : i32, i32
  }
}

</mosaic_0001>

<bundles_post_ra>
// kernel: crf_refine.1
= control target key start
LH: loop header
LB: loop body
LE: loop exit
PB: predicated region body
PF: predicated region fallthrough
CT: control target
= control target key end

     0   :  { %s769_s0 = smov 127   ;;  %v112_v3 = vlaneseq  ;;  %v771_v31 = vmov 0.0   ;;  %s1052_s1 = inlined_call_operand.vmem [shape: f32[40,128], index: 1, kind: input, shape index: {}, may-alias: {0,1,2}]   ;;  %s1053_s2 = inlined_call_operand.vmem [shape: f32[40,128], index: 2, kind: input, shape index: {}, may-alias: {0,1,2}]   ;;  %s1054_s0 = inlined_call_operand.vmem [shape: f32[40,128], index: 0, kind: input, shape index: {}, may-alias: {0,1,2}]   ;;  %s1055_s3 = inlined_call_operand.vmem [shape: f32[16,128], index: 3, kind: output, shape index: {0}]   ;;  %s1056_s4 = inlined_call_operand.vmem [shape: f32[8,128], index: 4, kind: output, shape index: {1}]   ;;  %s1057_s5 = inlined_call_operand.vmem [shape: f32[8,128], index: 5, kind: output, shape index: {2}]  }
   0x1   :  { %v805_v0 = vld [vmem:[%s1052_s1 + $0x10] sm:$0xff]  ;;  %v810_v1 = vld [vmem:[%s1053_s2 + $0x20] sm:$0xff]  ;;  %v819_v2 = vld [vmem:[%s1052_s1 + $0x18] sm:$0xff]  ;;  %s770_s2 = smov 1   ;;  %v856_v32 = vrot.slane %v771_v31, 7 }
   0x2   :  { %150 = vrot.lane.b32.xlu0 %v805_v0, %s769_s0  ;;  %154 = vrot.lane.b32.xlu2 %v810_v1, %s769_s0  ;;  %v823_v4 = vand.u32 127, %v112_v3  ;;  %v838_v17 = vshrl.u32 %v112_v3, 7  ;;  %v142_v18 = vrot.slane %v810_v1, 1  ;;  %v141_v19 = vrot.slane %v819_v2, 1 }
   0x3   :  { %v140_v20 = vrot.slane %v805_v0, 1 }
   0x4   :  { %vm138_vm0 = vcmp.le.s32.totalorder %v823_v4, 14  ;;  %vm143_vm1 = vcmp.lt.s32.totalorder %v838_v17, 7  ;;  %v115_v21 = vadd.s32 16, %v838_v17  ;;  %vm184_vm3 = vcmp.lt.s32.totalorder %v838_v17, 1 }
   0x5   :  { %v144_v22 = vsel %vm143_vm1, %v141_v19, %v142_v18  ;;  %v145_v23 = vsel %vm143_vm1, %v140_v20, %v141_v19  ;;  %vm641_vm4 = vcmp.lt.s32.totalorder %v823_v4, 16 }
   0x6   :  { %v158_v24 = vsub.f32 %v819_v2, %v144_v22  ;;  %v850_v25 = vadd.s32 4294967288, %v115_v21  ;;  %v157_v26 = vsub.f32 %v805_v0, %v145_v23 }
   0x8   :  { %v162_v27 = vand.u32 2147483647, %v158_v24  ;;  %vm132_vm2 = vcmp.le.s32.totalorder %v850_v25, 14  ;;  %v161_v28 = vand.u32 2147483647, %v157_v26 }
   0xa   :  { %152 = vrot.lane.b32.xlu0 %v819_v2, %s769_s0  ;;  %v166_v29 = vsel %vm132_vm2, %v162_v27, 0.0  ;;  %v181_v33 = vrot.slane %v161_v28, 7 }
   0xb   :  { %v182_v34 = vrot.slane %v166_v29, 7 }
   0xc   :  { %v187_v37 = vsel %vm184_vm3, %v856_v32, %v181_v33 }
   0xd   :  { %v185_v36 = vsel %vm184_vm3, %v182_v34, %v856_v32  ;;  %v190_v39 = vadd.f32 %v187_v37, %v161_v28  ;;  %v186_v44 = vsel %vm184_vm3, %v181_v33, %v182_v34 }
   0xe   :  { %v191_v46 = vadd.f32 %v186_v44, %v166_v29 }
  0x5c   :  { %v155_v5 = vpop.permute.xlu2 %154 }
  0x5d   :  { %v171_v6 = vsub.f32 %v810_v1, %v155_v5 }
  0x5f   :  { %v175_v7 = vand.u32 2147483647, %v171_v6 }
  0x61   :  { %v179_v8 = vsel %vm138_vm0, %v175_v7, 0.0 }
  0x62   :  { %199 = vrot.lane.b32.xlu2 %v179_v8, %s770_s2 }
  0x74   :  { %v151_v9 = vpop.permute.xlu0 %150 }
  0x75   :  { %v169_v10 = vsub.f32 %v805_v0, %v151_v9 }
  0x77   :  { %v173_v11 = vand.u32 2147483647, %v169_v10 }
  0x79   :  { %v177_v12 = vsel %vm138_vm0, %v173_v11, 0.0 }
  0x7a   :  { %195 = vrot.lane.b32.xlu1 %v177_v12, %s770_s2 }
  0x7c   :  { %v153_v13 = vpop.permute.xlu0 %152 }
  0x7d   :  { %v170_v14 = vsub.f32 %v819_v2, %v153_v13 }
  0x7f   :  { %v174_v15 = vand.u32 2147483647, %v170_v14 }
  0x81   :  { %v178_v16 = vsel %vm138_vm0, %v174_v15, 0.0 }
  0x82   :  { %197 = vrot.lane.b32.xlu1 %v178_v16, %s770_s2 }
  0xbc   :  { %v200_v30 = vpop.permute.xlu2 %199 }
  0xbd   :  { %v204_v35 = vadd.f32 %v200_v30, %v179_v8 }
  0xbf   :  { %v208_v38 = vadd.f32 %v204_v35, %v185_v36 }
  0xc1   :  { %v212_v42 = vmul.f32 0.7213475, %v208_v38 }
  0xc3   :  { %713 = vpow2.f32 %v212_v42 }
  0xc9   :  { %v714_v50 = vpop.eup %713 }
  0xca   :  { %v220_v54 = vadd.f32 %v714_v50, %v810_v1 }
  0xec   :  { %v196_v40 = vpop.permute.xlu1 %195 }
  0xed   :  { %v202_v41 = vadd.f32 %v196_v40, %v177_v12 }
  0xef   :  { %v206_v43 = vadd.f32 %v202_v41, %v190_v39 }
  0xf1   :  { %v210_v45 = vmul.f32 0.7213475, %v206_v43 }
  0xf3   :  { %715 = vpow2.f32 %v210_v45 }
  0xf4   :  { %v198_v47 = vpop.permute.xlu1 %197 }
  0xf5   :  { %v203_v48 = vadd.f32 %v198_v47, %v178_v16 }
  0xf7   :  { %v207_v49 = vadd.f32 %v203_v48, %v191_v46 }
  0xf9   :  { %v716_v51 = vpop.eup %715  ;;  %v211_v52 = vmul.f32 0.7213475, %v207_v49 }
  0xfa   :  { %v218_v53 = vadd.f32 %v716_v51, %v805_v0 }
  0xfb   :  { %717 = vpow2.f32 %v211_v52 }
  0xfc   :  { %719 = vrcp.f32 %v218_v53 }
  0xfd   :  { %721 = vrcp.f32 %v220_v54 }
 0x101   :  { %v718_v55 = vpop.eup %717 }
 0x102   :  { %v720_v56 = vpop.eup %719  ;;  %v219_v57 = vadd.f32 %v718_v55, %v819_v2 }
 0x103   :  { %v226_v58 = vmul.f32 %v720_v56, %v218_v53  ;;  %v722_v60 = vpop.eup %721 }
 0x104   :  { %723 = vrcp.f32 %v219_v57  ;;  %v228_v63 = vmul.f32 %v722_v60, %v220_v54 }
 0x105   :  { %v230_v59 = vsub.f32 2.0, %v226_v58 }
 0x106   :  { %v232_v7 = vsub.f32 2.0, %v228_v63 }
 0x107   :  { %v234_v61 = vmul.f32 %v720_v56, %v230_v59 }
 0x108   :  { %v236_v12 = vmul.f32 %v722_v60, %v232_v7 }
 0x109   :  { %v238_v62 = vmul.f32 %v805_v0, %v234_v61 }
 0x10a   :  { %v724_v3 = vpop.eup %723  ;;  %v240_v15 = vmul.f32 %v810_v1, %v236_v12 }
 0x10b   :  { %v242_v5 = vmax.f32 %v238_v62, 1e-05  ;;  %v227_v6 = vmul.f32 %v724_v3, %v219_v57 }
 0x10c   :  { %v244_v0 = vmax.f32 %v240_v15, 1e-05 }
 0x10d   :  { %v231_v8 = vsub.f32 2.0, %v227_v6  ;;  %v246_v9 = vmin.f32 %v242_v5, 0.99999 }
 0x10e   :  { %v878_v16 = vmin.f32 %v244_v0, 0.99999 }
 0x10f   :  { %v235_v10 = vmul.f32 %v724_v3, %v231_v8  ;;  %259 = vrot.lane.b32.xlu0 %v246_v9, %s769_s0  ;;  %v250_v30 = vrot.slane %v246_v9, 1 }
 0x110   :  { %v252_v38 = vrot.slane %v878_v16, 1 }
 0x111   :  { %v239_v11 = vmul.f32 %v819_v2, %v235_v10 }
 0x113   :  { %v243_v13 = vmax.f32 %v239_v11, 1e-05 }
 0x115   :  { %v873_v14 = vmin.f32 %v243_v13, 0.99999 }
 0x117   :  { %261 = vrot.lane.b32.xlu1 %v873_v14, %s769_s0  ;;  %v251_v29 = vrot.slane %v873_v14, 1 }
 0x119   :  { %v254_v31 = vsel %vm143_vm1, %v250_v30, %v251_v29  ;;  %v253_v42 = vsel %vm143_vm1, %v251_v29, %v252_v38 }
 0x11a   :  { %v266_v33 = vsub.f32 %v246_v9, %v254_v31  ;;  %v267_v44 = vsub.f32 %v873_v14, %v253_v42 }
 0x11c   :  { %v270_v34 = vand.u32 2147483647, %v266_v33  ;;  %v271_v45 = vand.u32 2147483647, %v267_v44 }
 0x11e   :  { %v290_v35 = vrot.slane %v270_v34, 7  ;;  %v275_v48 = vsel %vm132_vm2, %v271_v45, 0.0 }
 0x11f   :  { %263 = vrot.lane.b32.xlu1 %v878_v16, %s769_s0  ;;  %v291_v50 = vrot.slane %v275_v48, 7 }
 0x120   :  { %v295_v36 = vsel %vm184_vm3, %v856_v32, %v290_v35 }
 0x121   :  { %v298_v39 = vadd.f32 %v295_v36, %v270_v34  ;;  %v293_v53 = vsel %vm184_vm3, %v291_v50, %v856_v32  ;;  %v294_v60 = vsel %vm184_vm3, %v290_v35, %v291_v50 }
 0x122   :  { %v299_v63 = vadd.f32 %v294_v60, %v275_v48 }
 0x181   :  { %v260_v18 = vpop.permute.xlu0 %259 }
 0x182   :  { %v278_v19 = vsub.f32 %v246_v9, %v260_v18 }
 0x184   :  { %v282_v20 = vand.u32 2147483647, %v278_v19 }
 0x186   :  { %v286_v2 = vsel %vm138_vm0, %v282_v20, 0.0 }
 0x187   :  { %303 = vrot.lane.b32.xlu2 %v286_v2, %s770_s2 }
 0x189   :  { %v262_v21 = vpop.permute.xlu1 %261 }
 0x18a   :  { %v279_v1 = vsub.f32 %v873_v14, %v262_v21 }
 0x18c   :  { %v283_v22 = vand.u32 2147483647, %v279_v1 }
 0x18e   :  { %v287_v23 = vsel %vm138_vm0, %v283_v22, 0.0 }
 0x18f   :  { %305 = vrot.lane.b32.xlu0 %v287_v23, %s770_s2 }
 0x191   :  { %v264_v24 = vpop.permute.xlu1 %263 }
 0x192   :  { %v280_v26 = vsub.f32 %v878_v16, %v264_v24 }
 0x194   :  { %v284_v27 = vand.u32 2147483647, %v280_v26 }
 0x196   :  { %v288_v28 = vsel %vm138_vm0, %v284_v27, 0.0 }
 0x197   :  { %307 = vrot.lane.b32.xlu2 %v288_v28, %s770_s2 }
 0x1e1   :  { %v304_v37 = vpop.permute.xlu2 %303 }
 0x1e2   :  { %v310_v40 = vadd.f32 %v304_v37, %v286_v2 }
 0x1e4   :  { %v314_v41 = vadd.f32 %v310_v40, %v298_v39 }
 0x1e6   :  { %v318_v43 = vmul.f32 0.7213475, %v314_v41 }
 0x1e8   :  { %725 = vpow2.f32 %v318_v43 }
 0x1ee   :  { %v726_v46 = vpop.eup %725 }
 0x1ef   :  { %v326_v47 = vadd.f32 %v726_v46, %v246_v9 }
 0x1f1   :  { %727 = vrcp.f32 %v326_v47  ;;  %v308_v49 = vpop.permute.xlu2 %307 }
 0x1f2   :  { %v312_v51 = vadd.f32 %v308_v49, %v288_v28 }
 0x1f4   :  { %v316_v55 = vadd.f32 %v312_v51, %v293_v53 }
 0x1f6   :  { %v320_v58 = vmul.f32 0.7213475, %v316_v55 }
 0x1f7   :  { %v728_v52 = vpop.eup %727 }
 0x1f8   :  { %v334_v54 = vmul.f32 %v728_v52, %v326_v47  ;;  %729 = vpow2.f32 %v320_v58 }
 0x1fa   :  { %v338_v56 = vsub.f32 2.0, %v334_v54 }
 0x1fc   :  { %v342_v57 = vmul.f32 %v728_v52, %v338_v56 }
 0x1fe   :  { %v346_v59 = vmul.f32 %v342_v57, %v246_v9  ;;  %v730_v7 = vpop.eup %729 }
 0x1ff   :  { %v328_v10 = vadd.f32 %v730_v7, %v878_v16 }
 0x200   :  { %v350_v61 = vmax.f32 %v346_v59, 1e-05 }
 0x201   :  { %v306_v62 = vpop.permute.xlu0 %305 }
 0x202   :  { %v311_v3 = vadd.f32 %v306_v62, %v287_v23  ;;  %v910_v5 = vmin.f32 %v350_v61, 0.99999 }
 0x204   :  { %v315_v6 = vadd.f32 %v311_v3, %v299_v63  ;;  %367 = vrot.lane.b32.xlu0 %v910_v5, %s769_s0  ;;  %v358_v39 = vrot.slane %v910_v5, 1 }
 0x206   :  { %v319_v8 = vmul.f32 0.7213475, %v315_v6 }
 0x208   :  { %731 = vpow2.f32 %v319_v8 }
 0x209   :  { %733 = vrcp.f32 %v328_v10 }
 0x20e   :  { %v732_v9 = vpop.eup %731 }
 0x20f   :  { %v327_v11 = vadd.f32 %v732_v9, %v873_v14  ;;  %v734_v12 = vpop.eup %733 }
 0x210   :  { %v336_v13 = vmul.f32 %v734_v12, %v328_v10 }
 0x211   :  { %735 = vrcp.f32 %v327_v11 }
 0x212   :  { %v340_v18 = vsub.f32 2.0, %v336_v13 }
 0x214   :  { %v344_v21 = vmul.f32 %v734_v12, %v340_v18 }
 0x216   :  { %v348_v23 = vmul.f32 %v344_v21, %v878_v16 }
 0x217   :  { %v736_v15 = vpop.eup %735 }
 0x218   :  { %v335_v0 = vmul.f32 %v736_v15, %v327_v11  ;;  %v352_v24 = vmax.f32 %v348_v23, 1e-05 }
 0x21a   :  { %v339_v19 = vsub.f32 2.0, %v335_v0  ;;  %v922_v26 = vmin.f32 %v352_v24, 0.99999 }
 0x21c   :  { %v343_v20 = vmul.f32 %v736_v15, %v339_v19  ;;  %v360_v53 = vrot.slane %v922_v26, 1 }
 0x21e   :  { %v347_v2 = vmul.f32 %v343_v20, %v873_v14 }
 0x220   :  { %v351_v1 = vmax.f32 %v347_v2, 1e-05 }
 0x222   :  { %v917_v22 = vmin.f32 %v351_v1, 0.99999 }
 0x224   :  { %369 = vrot.lane.b32.xlu1 %v917_v22, %s769_s0  ;;  %v359_v38 = vrot.slane %v917_v22, 1 }
 0x226   :  { %v362_v40 = vsel %vm143_vm1, %v358_v39, %v359_v38  ;;  %v361_v55 = vsel %vm143_vm1, %v359_v38, %v360_v53 }
 0x227   :  { %v374_v41 = vsub.f32 %v910_v5, %v362_v40  ;;  %v375_v58 = vsub.f32 %v917_v22, %v361_v55 }
 0x229   :  { %v378_v42 = vand.u32 2147483647, %v374_v41  ;;  %v379_v61 = vand.u32 2147483647, %v375_v58 }
 0x22b   :  { %v398_v43 = vrot.slane %v378_v42, 7  ;;  %v383_v63 = vsel %vm132_vm2, %v379_v61, 0.0 }
 0x22c   :  { %371 = vrot.lane.b32.xlu1 %v922_v26, %s769_s0  ;;  %v399_v3 = vrot.slane %v383_v63, 7 }
 0x22d   :  { %v403_v44 = vsel %vm184_vm3, %v856_v32, %v398_v43 }
 0x22e   :  { %v406_v46 = vadd.f32 %v403_v44, %v378_v42  ;;  %v401_v8 = vsel %vm184_vm3, %v399_v3, %v856_v32  ;;  %v402_v12 = vsel %vm184_vm3, %v398_v43, %v399_v3 }
 0x22f   :  { %v407_v15 = vadd.f32 %v402_v12, %v383_v63 }
 0x276   :  { %v368_v27 = vpop.permute.xlu0 %367 }
 0x277   :  { %v386_v28 = vsub.f32 %v910_v5, %v368_v27 }
 0x279   :  { %v390_v29 = vand.u32 2147483647, %v386_v28 }
 0x27b   :  { %v394_v14 = vsel %vm138_vm0, %v390_v29, 0.0 }
 0x27c   :  { %411 = vrot.lane.b32.xlu2 %v394_v14, %s770_s2 }
 0x296   :  { %v370_v30 = vpop.permute.xlu1 %369 }
 0x297   :  { %v387_v16 = vsub.f32 %v917_v22, %v370_v30 }
 0x299   :  { %v391_v31 = vand.u32 2147483647, %v387_v16 }
 0x29b   :  { %v395_v33 = vsel %vm138_vm0, %v391_v31, 0.0 }
 0x29c   :  { %413 = vrot.lane.b32.xlu0 %v395_v33, %s770_s2 }
 0x29e   :  { %v372_v34 = vpop.permute.xlu1 %371 }
 0x29f   :  { %v388_v35 = vsub.f32 %v922_v26, %v372_v34 }
 0x2a1   :  { %v392_v36 = vand.u32 2147483647, %v388_v35 }
 0x2a3   :  { %v396_v37 = vsel %vm138_vm0, %v392_v36, 0.0 }
 0x2a4   :  { %415 = vrot.lane.b32.xlu2 %v396_v37, %s770_s2 }
 0x2d6   :  { %v412_v45 = vpop.permute.xlu2 %411 }
 0x2d7   :  { %v418_v47 = vadd.f32 %v412_v45, %v394_v14 }
 0x2d9   :  { %v422_v48 = vadd.f32 %v418_v47, %v406_v46 }
 0x2db   :  { %v426_v49 = vmul.f32 0.7213475, %v422_v48 }
 0x2dd   :  { %737 = vpow2.f32 %v426_v49 }
 0x2e3   :  { %v738_v50 = vpop.eup %737 }
 0x2e4   :  { %v434_v51 = vadd.f32 %v738_v50, %v910_v5 }
 0x2e6   :  { %739 = vrcp.f32 %v434_v51 }
 0x2ec   :  { %v740_v52 = vpop.eup %739 }
 0x2ed   :  { %v442_v54 = vmul.f32 %v740_v52, %v434_v51 }
 0x2ef   :  { %v446_v56 = vsub.f32 2.0, %v442_v54 }
 0x2f1   :  { %v450_v57 = vmul.f32 %v740_v52, %v446_v56 }
 0x2f3   :  { %v454_v59 = vmul.f32 %v450_v57, %v910_v5 }
 0x2f5   :  { %v458_v60 = vmax.f32 %v454_v59, 1e-05 }
 0x2f7   :  { %v952_v62 = vmin.f32 %v458_v60, 0.99999 }
 0x2f9   :  { %475 = vrot.lane.b32.xlu0 %v952_v62, %s769_s0  ;;  %v466_v36 = vrot.slane %v952_v62, 1 }
 0x2fe   :  { %v416_v6 = vpop.permute.xlu2 %415 }
 0x2ff   :  { %v420_v7 = vadd.f32 %v416_v6, %v396_v37 }
 0x301   :  { %v424_v10 = vadd.f32 %v420_v7, %v401_v8 }
 0x303   :  { %v428_v9 = vmul.f32 0.7213475, %v424_v10 }
 0x305   :  { %741 = vpow2.f32 %v428_v9 }
 0x30b   :  { %v742_v5 = vpop.eup %741 }
 0x30c   :  { %v436_v11 = vadd.f32 %v742_v5, %v922_v26 }
 0x30e   :  { %v414_v13 = vpop.permute.xlu0 %413  ;;  %743 = vrcp.f32 %v436_v11 }
 0x30f   :  { %v419_v0 = vadd.f32 %v414_v13, %v395_v33 }
 0x311   :  { %v423_v18 = vadd.f32 %v419_v0, %v407_v15 }
 0x313   :  { %v427_v19 = vmul.f32 0.7213475, %v423_v18 }
 0x314   :  { %v744_v20 = vpop.eup %743 }
 0x315   :  { %745 = vpow2.f32 %v427_v19  ;;  %v444_v2 = vmul.f32 %v744_v20, %v436_v11 }
 0x317   :  { %v448_v23 = vsub.f32 2.0, %v444_v2 }
 0x319   :  { %v452_v24 = vmul.f32 %v744_v20, %v448_v23 }
 0x31b   :  { %v746_v21 = vpop.eup %745  ;;  %v456_v29 = vmul.f32 %v452_v24, %v922_v26 }
 0x31c   :  { %v435_v1 = vadd.f32 %v746_v21, %v917_v22 }
 0x31d   :  { %v460_v16 = vmax.f32 %v456_v29, 1e-05 }
 0x31e   :  { %747 = vrcp.f32 %v435_v1 }
 0x31f   :  { %v967_v34 = vmin.f32 %v460_v16, 0.99999 }
 0x321   :  { %v468_v38 = vrot.slane %v967_v34, 1 }
 0x324   :  { %v748_v27 = vpop.eup %747 }
 0x325   :  { %v443_v28 = vmul.f32 %v748_v27, %v435_v1 }
 0x327   :  { %v447_v14 = vsub.f32 2.0, %v443_v28 }
 0x329   :  { %v451_v30 = vmul.f32 %v748_v27, %v447_v14 }
 0x32b   :  { %v455_v31 = vmul.f32 %v451_v30, %v917_v22 }
 0x32d   :  { %v459_v33 = vmax.f32 %v455_v31, 1e-05 }
 0x32f   :  { %v969_v35 = vmin.f32 %v459_v33, 0.99999 }
 0x331   :  { %477 = vrot.lane.b32.xlu1 %v969_v35, %s769_s0  ;;  %v467_v37 = vrot.slane %v969_v35, 1 }
 0x333   :  { %v470_v26 = vsel %vm143_vm1, %v466_v36, %v467_v37  ;;  %v469_v22 = vsel %vm143_vm1, %v467_v37, %v468_v38 }
 0x334   :  { %v482_v39 = vsub.f32 %v952_v62, %v470_v26  ;;  %v483_v40 = vsub.f32 %v969_v35, %v469_v22 }
 0x336   :  { %v486_v41 = vand.u32 2147483647, %v482_v39  ;;  %v487_v42 = vand.u32 2147483647, %v483_v40 }
 0x338   :  { %v506_v43 = vrot.slane %v486_v41, 7  ;;  %v491_v44 = vsel %vm132_vm2, %v487_v42, 0.0 }
 0x339   :  { %479 = vrot.lane.b32.xlu1 %v967_v34, %s769_s0  ;;  %v507_v45 = vrot.slane %v491_v44, 7 }
 0x33a   :  { %v511_v60 = vsel %vm184_vm3, %v856_v32, %v506_v43 }
 0x33b   :  { %v510_v46 = vsel %vm184_vm3, %v506_v43, %v507_v45  ;;  %v514_v63 = vadd.f32 %v511_v60, %v486_v41  ;;  %v509_v20 = vsel %vm184_vm3, %v507_v45, %v856_v32 }
 0x33c   :  { %v515_v47 = vadd.f32 %v510_v46, %v491_v44 }
 0x36b   :  { %v476_v48 = vpop.permute.xlu0 %475 }
 0x36c   :  { %v494_v49 = vsub.f32 %v952_v62, %v476_v48 }
 0x36e   :  { %v498_v50 = vand.u32 2147483647, %v494_v49 }
 0x370   :  { %v502_v51 = vsel %vm138_vm0, %v498_v50, 0.0 }
 0x371   :  { %519 = vrot.lane.b32.xlu2 %v502_v51, %s770_s2 }
 0x3a3   :  { %v478_v52 = vpop.permute.xlu1 %477 }
 0x3a4   :  { %v495_v53 = vsub.f32 %v969_v35, %v478_v52 }
 0x3a6   :  { %v499_v54 = vand.u32 2147483647, %v495_v53 }
 0x3a8   :  { %v503_v55 = vsel %vm138_vm0, %v499_v54, 0.0 }
 0x3a9   :  { %521 = vrot.lane.b32.xlu0 %v503_v55, %s770_s2 }
 0x3ab   :  { %v480_v56 = vpop.permute.xlu1 %479 }
 0x3ac   :  { %v496_v57 = vsub.f32 %v967_v34, %v480_v56 }
 0x3ae   :  { %v500_v58 = vand.u32 2147483647, %v496_v57 }
 0x3b0   :  { %v504_v59 = vsel %vm138_vm0, %v500_v58, 0.0 }
 0x3b1   :  { %523 = vrot.lane.b32.xlu2 %v504_v59, %s770_s2 }
 0x3cb   :  { %v520_v61 = vpop.permute.xlu2 %519 }
 0x3cc   :  { %v526_v3 = vadd.f32 %v520_v61, %v502_v51 }
 0x3ce   :  { %v530_v6 = vadd.f32 %v526_v3, %v514_v63 }
 0x3d0   :  { %v534_v7 = vmul.f32 0.7213475, %v530_v6 }
 0x3d2   :  { %749 = vpow2.f32 %v534_v7 }
 0x3d8   :  { %v750_v8 = vpop.eup %749 }
 0x3d9   :  { %v542_v10 = vadd.f32 %v750_v8, %v952_v62 }
 0x3db   :  { %751 = vrcp.f32 %v542_v10 }
 0x3e1   :  { %v752_v9 = vpop.eup %751 }
 0x3e2   :  { %v550_v5 = vmul.f32 %v752_v9, %v542_v10 }
 0x3e4   :  { %v554_v11 = vsub.f32 2.0, %v550_v5 }
 0x3e6   :  { %v558_v12 = vmul.f32 %v752_v9, %v554_v11 }
 0x3e8   :  { %v562_v13 = vmul.f32 %v558_v12, %v952_v62 }
 0x3ea   :  { %v566_v15 = vmax.f32 %v562_v13, 1e-05 }
 0x3ec   :  { %v1005_v0 = vmin.f32 %v566_v15, 0.99999 }
 0x3ee   :  { %580 = vrot.lane.b32.xlu0 %v1005_v0, %s769_s0  ;;  %v574_v44 = vrot.slane %v1005_v0, 1 }
 0x40b   :  { %v524_v18 = vpop.permute.xlu2 %523 }
 0x40c   :  { %v528_v19 = vadd.f32 %v524_v18, %v504_v59 }
 0x40e   :  { %v532_v2 = vadd.f32 %v528_v19, %v509_v20 }
 0x410   :  { %v536_v21 = vmul.f32 0.7213475, %v532_v2 }
 0x412   :  { %753 = vpow2.f32 %v536_v21 }
 0x418   :  { %v754_v1 = vpop.eup %753 }
 0x419   :  { %v544_v23 = vadd.f32 %v754_v1, %v967_v34 }
 0x41b   :  { %v522_v24 = vpop.permute.xlu0 %521  ;;  %755 = vrcp.f32 %v544_v23 }
 0x41c   :  { %v527_v62 = vadd.f32 %v522_v24, %v503_v55 }
 0x41e   :  { %v531_v27 = vadd.f32 %v527_v62, %v515_v47 }
 0x420   :  { %v535_v28 = vmul.f32 0.7213475, %v531_v27 }
 0x421   :  { %v756_v29 = vpop.eup %755 }
 0x422   :  { %757 = vpow2.f32 %v535_v28  ;;  %v552_v14 = vmul.f32 %v756_v29, %v544_v23 }
 0x424   :  { %v556_v31 = vsub.f32 2.0, %v552_v14 }
 0x426   :  { %v560_v33 = vmul.f32 %v756_v29, %v556_v31 }
 0x428   :  { %v758_v30 = vpop.eup %757  ;;  %v564_v38 = vmul.f32 %v560_v33, %v967_v34 }
 0x429   :  { %v543_v16 = vadd.f32 %v758_v30, %v969_v35 }
 0x42a   :  { %v568_v39 = vmax.f32 %v564_v38, 1e-05 }
 0x42b   :  { %759 = vrcp.f32 %v543_v16 }
 0x42c   :  { %v572_v42 = vmin.f32 %v568_v39, 0.99999 }
 0x42e   :  { %v576_v46 = vrot.slane %v572_v42, 1 }
 0x431   :  { %v760_v36 = vpop.eup %759 }
 0x432   :  { %v551_v37 = vmul.f32 %v760_v36, %v543_v16 }
 0x434   :  { %v555_v26 = vsub.f32 2.0, %v551_v37 }
 0x436   :  { %v559_v22 = vmul.f32 %v760_v36, %v555_v26 }
 0x438   :  { %v563_v40 = vmul.f32 %v559_v22, %v969_v35 }
 0x43a   :  { %v567_v41 = vmax.f32 %v563_v40, 1e-05 }
 0x43c   :  { %v571_v43 = vmin.f32 %v567_v41, 0.99999 }
 0x43e   :  { %582 = vrot.lane.b32.xlu1 %v571_v43, %s769_s0  ;;  %v575_v45 = vrot.slane %v571_v43, 1 }
 0x440   :  { %v578_v47 = vsel %vm143_vm1, %v574_v44, %v575_v45  ;;  %v577_v34 = vsel %vm143_vm1, %v575_v45, %v576_v46 }
 0x441   :  { %v585_v48 = vsub.f32 %v1005_v0, %v578_v47  ;;  %v586_v49 = vsub.f32 %v571_v43, %v577_v34 }
 0x443   :  { %v588_v50 = vand.u32 2147483647, %v585_v48  ;;  %v589_v35 = vand.u32 2147483647, %v586_v49 }
 0x445   :  { %v600_v51 = vrot.slane %v588_v50, 7  ;;  %v592_v52 = vsel %vm132_vm2, %v589_v35, 0.0 }
 0x446   :  { %v601_v53 = vrot.slane %v592_v52, 7 }
 0x447   :  { %v603_v3 = vsel %vm184_vm3, %v856_v32, %v600_v51 }
 0x448   :  { %v602_v54 = vsel %vm184_vm3, %v600_v51, %v601_v53  ;;  %v604_v7 = vadd.f32 %v603_v3, %v588_v50 }
 0x449   :  { %v605_v55 = vadd.f32 %v602_v54, %v592_v52 }
 0x460   :  { %v581_v56 = vpop.permute.xlu0 %580 }
 0x461   :  { %v593_v57 = vsub.f32 %v1005_v0, %v581_v56 }
 0x463   :  { %v595_v58 = vand.u32 2147483647, %v593_v57 }
 0x465   :  { %v597_v59 = vsel %vm138_vm0, %v595_v58, 0.0 }
 0x466   :  { %606 = vrot.lane.b32.xlu2 %v597_v59, %s770_s2 }
 0x4b0   :  { %v583_v60 = vpop.permute.xlu1 %582 }
 0x4b1   :  { %v594_v61 = vsub.f32 %v571_v43, %v583_v60 }
 0x4b3   :  { %v596_v63 = vand.u32 2147483647, %v594_v61 }
 0x4b5   :  { %v598_v25 = vsel %vm138_vm0, %v596_v63, 0.0 }
 0x4b6   :  { %608 = vrot.lane.b32.xlu0 %v598_v25, %s770_s2 }
 0x4c0   :  { %v607_v6 = vpop.permute.xlu2 %606 }
 0x4c1   :  { %v610_v8 = vadd.f32 %v607_v6, %v597_v59 }
 0x4c3   :  { %v612_v10 = vadd.f32 %v610_v8, %v604_v7 }
 0x4c5   :  { %v614_v9 = vmul.f32 0.7213475, %v612_v10 }
 0x4c7   :  { %761 = vpow2.f32 %v614_v9 }
 0x4cd   :  { %v762_v5 = vpop.eup %761 }
 0x4ce   :  { %v618_v11 = vadd.f32 %v762_v5, %v1005_v0 }
 0x4d0   :  { %763 = vrcp.f32 %v618_v11 }
 0x4d6   :  { %v764_v12 = vpop.eup %763 }
 0x4d7   :  { %v622_v13 = vmul.f32 %v764_v12, %v618_v11 }
 0x4d9   :  { %v624_v15 = vsub.f32 2.0, %v622_v13 }
 0x4db   :  { %v626_v18 = vmul.f32 %v764_v12, %v624_v15 }
 0x4dd   :  { %v628_v19 = vmul.f32 %v626_v18, %v1005_v0 }
 0x4df   :  { %v630_v20 = vmax.f32 %v628_v19, 1e-05 }
 0x4e1   :  { %v632_v2 = vmin.f32 %v630_v20, 0.99999 }
 0x4e3   :  { %634 = vst [vmem:[%s1055_s3] sm:$0xff] %v632_v2  ;;  %v656_v16 = vsel %vm641_vm4, %v632_v2, -1.0  ;;  %v644_v33 = vsel %vm641_vm4, %v632_v2, 2.0 }
 0x528   :  { %v609_v17 = vpop.permute.xlu0 %608 }
 0x529   :  { %v611_v32 = vadd.f32 %v609_v17, %v598_v25 }
 0x52b   :  { %v613_v21 = vadd.f32 %v611_v32, %v605_v55 }
 0x52d   :  { %v615_v1 = vmul.f32 0.7213475, %v613_v21 }
 0x52f   :  { %765 = vpow2.f32 %v615_v1 }
 0x535   :  { %v766_v23 = vpop.eup %765 }
 0x536   :  { %v619_v24 = vadd.f32 %v766_v23, %v571_v43 }
 0x538   :  { %767 = vrcp.f32 %v619_v24 }
 0x53e   :  { %v768_v62 = vpop.eup %767 }
 0x53f   :  { %v623_v27 = vmul.f32 %v768_v62, %v619_v24 }
 0x541   :  { %v625_v28 = vsub.f32 2.0, %v623_v27 }
 0x543   :  { %v627_v29 = vmul.f32 %v768_v62, %v625_v28 }
 0x545   :  { %v629_v14 = vmul.f32 %v627_v29, %v571_v43 }
 0x547   :  { %v631_v0 = vmax.f32 %v629_v14, 1e-05 }
 0x549   :  { %v633_v30 = vmin.f32 %v631_v0, 0.99999 }
 0x54b   :  { %v657_v31 = vsel %vm641_vm4, %v633_v30, -1.0  ;;  %635 = vst [vmem:[%s1055_s3 + $0x8] sm:$0xff] %v633_v30  ;;  %v645_v36 = vsel %vm641_vm4, %v633_v30, 2.0 }
 0x54c   :  { %v658_v37 = vmax.f32 %v656_v16, %v657_v31  ;;  %v646_v38 = vmin.f32 %v644_v33, %v645_v36 }
 0x54e   :  { %659 = vmax.xlane.f32.xlu2 %v658_v37  ;;  %647 = vmin.xlane.f32.xlu1 %v646_v38 }
 0x5c1   :  { %v660_v26 = vpop.xlane.xlu2 %659  ;;  %v648_v22 = vpop.xlane.xlu1 %647 }
 0x5c2   :  { %v661_v39 = vrot.slane %v660_v26, 4  ;;  %v649_v40 = vrot.slane %v648_v22, 4 }
 0x5c4   :  { %v662_v41 = vmax.f32 %v660_v26, %v661_v39  ;;  %v650_v42 = vmin.f32 %v648_v22, %v649_v40 }
 0x5c6   :  { %v663_v4 = vrot.slane %v662_v41, 2  ;;  %v651_v43 = vrot.slane %v650_v42, 2 }
 0x5c8   :  { %v664_v44 = vmax.f32 %v662_v41, %v663_v4  ;;  %v652_v45 = vmin.f32 %v650_v42, %v651_v43 }
 0x5ca   :  { %v653_v46 = vrot.slane %v652_v45, 1  ;;  %v665_v47 = vrot.slane %v664_v44, 1 }
 0x5cc   :  { %v654_v34 = vmin.f32 %v652_v45, %v653_v46  ;;  %v666_v48 = vmax.f32 %v664_v44, %v665_v47 }
 0x5ce   :  { %706 = vpush %v654_v34 }
 0x5cf   :  { %708 = vpush %v666_v48 }
 0x5ff   :  { %s707_s3 = spop %706 }
 0x600   :  { %v668_v49 = vstv %s707_s3  ;;  %s709_s27 = spop %708 }
 0x601   :  { %669 = vst [vmem:[%s1056_s4] sm:$0xff] %v668_v49  ;;  %v670_v50 = vstv %s709_s27 }
 0x602   :  { %671 = vst [vmem:[%s1057_s5] sm:$0xff] %v670_v50 }

</bundles_post_ra>
